<compile_context>
chip_gen: v5e
topology: v5e:2x2
jax: 0.10.0
libtpu: 0.0.40
codegen_flags: <defaults>
</compile_context>

<pallas_src>
import functools

import jax
import jax.numpy as jnp
from jax.experimental import pallas as pl
from jax.experimental.pallas import tpu as pltpu


# ---------------------------------------------------------------------------
# Kernel 1: partial per-sublane-group sum / sum-of-squares over row tiles.
# grid = (NSPLIT, steps_per_split); inner axis accumulates into the resident
# output block, outer axis writes independent partial blocks (megacore split).
# ---------------------------------------------------------------------------
def _stats_kernel(x_ref, sum_ref, sq_ref, *, sub):
    j = pl.program_id(1)

    @pl.when(j == 0)
    def _():
        sum_ref[...] = jnp.zeros_like(sum_ref)
        sq_ref[...] = jnp.zeros_like(sq_ref)

    rows = x_ref.shape[0]
    assert rows % sub == 0
    n_grp = rows // sub

    # Accumulate sublane-groups with plain VPU adds; no cross-lane/XLU work
    # here (the final (C,) reduction of these tiny partials is done in JAX).
    blk = x_ref[0:sub, :].astype(jnp.float32)
    s_acc = blk
    q_acc = blk * blk
    for g in range(1, n_grp):
        blk = x_ref[g * sub:(g + 1) * sub, :].astype(jnp.float32)
        s_acc = s_acc + blk
        q_acc = q_acc + blk * blk

    sum_ref[...] += s_acc
    sq_ref[...] += q_acc


# ---------------------------------------------------------------------------
# Kernel 2: fused normalize: y = x * scale + shift
# (scale/shift are per-channel values repeated along the C*H*W lane axis).
# ---------------------------------------------------------------------------
def _norm_kernel(x_ref, scale_ref, shift_ref, o_ref):
    x = x_ref[...].astype(jnp.float32)
    y = x * scale_ref[...] + shift_ref[...]
    o_ref[...] = y.astype(o_ref.dtype)


# ---------------------------------------------------------------------------
# Tiling helpers.
# ---------------------------------------------------------------------------
def _pick_row_tile(num_rows, row_bytes, target_bytes=2 * 1024 * 1024):
    """Largest row tile (divisor of num_rows, multiple of 8) within ~target_bytes."""
    if num_rows * row_bytes <= target_bytes or num_rows < 8:
        return num_rows  # single full-extent block
    max_rows = max(8, int(target_bytes // row_bytes) // 8 * 8)
    upper = min(max_rows, (num_rows // 8) * 8)
    for cand in range(upper, 7, -8):
        if num_rows % cand == 0:
            return cand
    # No suitable multiple-of-8 divisor: fall back to full extent (correct;
    # may exceed the byte target for awkward shapes).
    return num_rows


def _vmem_limit_bytes(block_bytes):
    # Norm pass holds ~2 in-blocks + 2 out-blocks (double buffering) + slack.
    want = max(32 * 1024 * 1024, 6 * block_bytes)
    try:
        cap = int(pltpu.get_tpu_info().vmem_capacity_bytes)
    except Exception:
        cap = 64 * 1024 * 1024  # v7x physical VMEM (smallest across gens)
    return int(min(want, int(cap * 0.9)))


# ---------------------------------------------------------------------------
# Wrapper: spiking-mode training forward of tdBatchNorm2d.
# ---------------------------------------------------------------------------
def td_batchnorm2d(x, weight, bias, running_mean, running_var, *,
                   alpha=0.5, v_th=0.5, eps=1e-5, momentum=0.1):
    """x: (T, B, C, H, W). Returns (y, new_running_mean, new_running_var)."""
    T, B, C, H, W = x.shape
    TB = T * B
    HW = H * W
    CHW = C * HW
    n_per_c = TB * HW  # elements reduced per channel

    # Free views of the native layout (no transposes, no extra HBM traffic).
    x_flat = x.reshape(TB, CHW)

    itemsize = jnp.dtype(x.dtype).itemsize
    row_bytes = CHW * itemsize
    tbt = _pick_row_tile(TB, row_bytes)
    steps = TB // tbt
    sub = 8 if tbt % 8 == 0 else tbt           # sublane-group size of partials
    nsplit = 2 if (steps >= 2 and steps % 2 == 0 and sub == 8) else 1
    jps = steps // nsplit
    block_bytes = tbt * row_bytes
    vmem_limit = _vmem_limit_bytes(block_bytes)

    # ---- pass 1: partial sums / sums-of-squares -----------------------------
    sum_p, sq_p = pl.pallas_call(
        functools.partial(_stats_kernel, sub=sub),
        out_shape=(jax.ShapeDtypeStruct((nsplit * sub, CHW), jnp.float32),
                   jax.ShapeDtypeStruct((nsplit * sub, CHW), jnp.float32)),
        grid_spec=pltpu.PrefetchScalarGridSpec(
            num_scalar_prefetch=0,
            grid=(nsplit, jps),
            in_specs=[pl.BlockSpec((tbt, CHW), lambda s, j: (s * jps + j, 0))],
            out_specs=(pl.BlockSpec((sub, CHW), lambda s, j: (s, 0)),
                       pl.BlockSpec((sub, CHW), lambda s, j: (s, 0)))),
        compiler_params=pltpu.CompilerParams(
            dimension_semantics=("parallel", "arbitrary"),
            vmem_limit_bytes=vmem_limit),
    )(x_flat)

    # ---- tiny per-channel finalize (JAX glue on KB-sized arrays) ------------
    sum_c = sum_p.reshape(nsplit * sub, C, HW).sum(axis=(0, 2))
    sq_c = sq_p.reshape(nsplit * sub, C, HW).sum(axis=(0, 2))
    inv_n = 1.0 / float(n_per_c)
    mean = sum_c * inv_n
    var = jnp.maximum(sq_c * inv_n - mean * mean, 0.0)   # clamp: E[x^2]-E[x]^2

    w32 = weight.astype(jnp.float32)
    b32 = bias.astype(jnp.float32)
    scale_c = (alpha * v_th) * w32 * jax.lax.rsqrt(var + jnp.float32(eps))
    shift_c = b32 - scale_c * mean
    # Repeat per-channel values along the flattened C*H*W lane axis.
    scale_row = jnp.broadcast_to(scale_c[:, None], (C, HW)).reshape(1, CHW)
    shift_row = jnp.broadcast_to(shift_c[:, None], (C, HW)).reshape(1, CHW)

    # ---- pass 2: fused normalize y = x*scale + shift ------------------------
    y_flat = pl.pallas_call(
        _norm_kernel,
        out_shape=jax.ShapeDtypeStruct((TB, CHW), x.dtype),
        grid_spec=pltpu.PrefetchScalarGridSpec(
            num_scalar_prefetch=0,
            grid=(steps,),
            in_specs=[pl.BlockSpec((tbt, CHW), lambda j: (j, 0)),
                      pl.BlockSpec((1, CHW), lambda j: (0, 0)),
                      pl.BlockSpec((1, CHW), lambda j: (0, 0))],
            out_specs=pl.BlockSpec((tbt, CHW), lambda j: (j, 0))),
        compiler_params=pltpu.CompilerParams(
            dimension_semantics=("parallel",),
            vmem_limit_bytes=vmem_limit),
    )(x_flat, scale_row, shift_row)

    y = y_flat.reshape(T, B, C, H, W)

    # ---- running-stat bookkeeping (parameter update, not the hot path) ------
    n = float(n_per_c)
    bessel = n / (n - 1.0) if n > 1.0 else 1.0
    eaf = momentum  # exponential_average_factor (num_batches_tracked is not None)
    new_rm = eaf * mean + (1.0 - eaf) * running_mean
    new_rv = eaf * var * bessel + (1.0 - eaf) * running_var
    return y, new_rm, new_rv


# ---------------------------------------------------------------------------
# Pure-JAX reference (mirrors the PyTorch spiking-training forward exactly).
# ---------------------------------------------------------------------------
def _reference(x, weight, bias, running_mean, running_var, *,
               alpha, v_th, eps, momentum):
    T, B, C, H, W = x.shape
    mean = x.mean(axis=(0, 1, 3, 4))
    var = x.var(axis=(0, 1, 3, 4))  # biased (unbiased=False)
    n = x.size / C
    new_rm = momentum * mean + (1 - momentum) * running_mean
    new_rv = momentum * var * n / (n - 1) + (1 - momentum) * running_var
    m5 = mean.reshape(1, 1, C, 1, 1)
    v5 = var.reshape(1, 1, C, 1, 1)
    y = alpha * v_th * (x - m5) / jnp.sqrt(v5 + eps)
    y = y * weight.reshape(1, 1, C, 1, 1) + bias.reshape(1, 1, C, 1, 1)
    return y, new_rm, new_rv


if __name__ == "__main__":
    T, B, C, H, W = 8, 2, 4, 16, 16
    alpha, v_th, eps, momentum = 0.5, 0.5, 1e-5, 0.1

    key = jax.random.PRNGKey(0)
    kx, kw, kb = jax.random.split(key, 3)
    x = jax.random.normal(kx, (T, B, C, H, W), dtype=jnp.float32) * 2.0 + 0.3
    weight = 1.0 + 0.1 * jax.random.normal(kw, (C,), dtype=jnp.float32)
    bias = 0.1 * jax.random.normal(kb, (C,), dtype=jnp.float32)
    running_mean = jnp.zeros((C,), jnp.float32)
    running_var = jnp.ones((C,), jnp.float32)

    y, new_rm, new_rv = td_batchnorm2d(
        x, weight, bias, running_mean, running_var,
        alpha=alpha, v_th=v_th, eps=eps, momentum=momentum)
    jax.block_until_ready((y, new_rm, new_rv))

    y_ref, rm_ref, rv_ref = _reference(
        x, weight, bias, running_mean, running_var,
        alpha=alpha, v_th=v_th, eps=eps, momentum=momentum)

    assert jnp.allclose(y, y_ref, atol=1e-4, rtol=1e-4), "output mismatch"
    assert jnp.allclose(new_rm, rm_ref, atol=1e-5, rtol=1e-5), "running_mean mismatch"
    assert jnp.allclose(new_rv, rv_ref, atol=1e-4, rtol=1e-4), "running_var mismatch"

    # TODO(synk): non-spiking / eval path (standard BatchNorm2d with running
    # stats) and the num_batches_tracked counter are host-side module state,
    # not implemented here.
    print("KERNEL_OK")
</pallas_src>

<mosaic_0001>
module attributes {stable_mosaic.version = 11 : i64} {
  func.func @_stats_kernel(%arg0: i32, %arg1: i32, %arg2: memref<16x1024xf32, #tpu.memory_space<vmem>>, %arg3: memref<8x1024xf32, #tpu.memory_space<vmem>>, %arg4: memref<8x1024xf32, #tpu.memory_space<vmem>>) attributes {dimension_semantics = [#tpu.dimension_semantics<parallel>, #tpu.dimension_semantics<arbitrary>], iteration_bounds = array<i64: 1, 1>, scalar_prefetch = 0 : i64, scratch_operands = 0 : i64, tpu.core_type = #tpu.core_type<tc>, window_params = [{transform_indices = @transform_0, window_bounds = array<i64: 16, 1024>}, {transform_indices = @transform_1, window_bounds = array<i64: 8, 1024>}, {transform_indices = @transform_2, window_bounds = array<i64: 8, 1024>}]} {
    %c0_i32 = arith.constant 0 : i32
    %0 = arith.cmpi eq, %arg1, %c0_i32 : i32
    %1 = arith.extui %0 : i1 to i32
    %c0_i32_0 = arith.constant 0 : i32
    %2 = arith.cmpi ne, %1, %c0_i32_0 : i32
    scf.if %2 {
      %cst = arith.constant 0.000000e+00 : f32
      %15 = vector.broadcast %cst : f32 to vector<8x1024xf32>
      %c0_11 = arith.constant 0 : index
      %c0_12 = arith.constant 0 : index
      %16 = vector.load %arg3[%c0_11, %c0_12] : memref<8x1024xf32, #tpu.memory_space<vmem>>, vector<8x1024xf32>
      tpu.vector_store %arg3[%c0_11, %c0_12], %15 {strides = array<i32>} : memref<8x1024xf32, #tpu.memory_space<vmem>>, vector<8x1024xf32>,
      %cst_13 = arith.constant 0.000000e+00 : f32
      %17 = vector.broadcast %cst_13 : f32 to vector<8x1024xf32>
      %c0_14 = arith.constant 0 : index
      %c0_15 = arith.constant 0 : index
      %18 = vector.load %arg4[%c0_14, %c0_15] : memref<8x1024xf32, #tpu.memory_space<vmem>>, vector<8x1024xf32>
      tpu.vector_store %arg4[%c0_14, %c0_15], %17 {strides = array<i32>} : memref<8x1024xf32, #tpu.memory_space<vmem>>, vector<8x1024xf32>,
    } else {
    }
    %c0 = arith.constant 0 : index
    %c0_1 = arith.constant 0 : index
    %3 = vector.load %arg2[%c0, %c0_1] : memref<16x1024xf32, #tpu.memory_space<vmem>>, vector<8x1024xf32>
    %4 = arith.mulf %3, %3 : vector<8x1024xf32>
    %c8 = arith.constant 8 : index
    %c0_2 = arith.constant 0 : index
    %5 = vector.load %arg2[%c8, %c0_2] : memref<16x1024xf32, #tpu.memory_space<vmem>>, vector<8x1024xf32>
    %6 = arith.addf %3, %5 : vector<8x1024xf32>
    %7 = arith.mulf %5, %5 : vector<8x1024xf32>
    %8 = arith.addf %4, %7 : vector<8x1024xf32>
    %c0_3 = arith.constant 0 : index
    %c0_4 = arith.constant 0 : index
    %9 = vector.load %arg3[%c0_3, %c0_4] : memref<8x1024xf32, #tpu.memory_space<vmem>>, vector<8x1024xf32>
    %10 = arith.addf %9, %6 : vector<8x1024xf32>
    %c0_5 = arith.constant 0 : index
    %c0_6 = arith.constant 0 : index
    %11 = vector.load %arg3[%c0_5, %c0_6] : memref<8x1024xf32, #tpu.memory_space<vmem>>, vector<8x1024xf32>
    tpu.vector_store %arg3[%c0_5, %c0_6], %10 {strides = array<i32>} : memref<8x1024xf32, #tpu.memory_space<vmem>>, vector<8x1024xf32>,
    %c0_7 = arith.constant 0 : index
    %c0_8 = arith.constant 0 : index
    %12 = vector.load %arg4[%c0_7, %c0_8] : memref<8x1024xf32, #tpu.memory_space<vmem>>, vector<8x1024xf32>
    %13 = arith.addf %12, %8 : vector<8x1024xf32>
    %c0_9 = arith.constant 0 : index
    %c0_10 = arith.constant 0 : index
    %14 = vector.load %arg4[%c0_9, %c0_10] : memref<8x1024xf32, #tpu.memory_space<vmem>>, vector<8x1024xf32>
    tpu.vector_store %arg4[%c0_9, %c0_10], %13 {strides = array<i32>} : memref<8x1024xf32, #tpu.memory_space<vmem>>, vector<8x1024xf32>,
    return
  }
  func.func @transform_0(%arg0: i32, %arg1: i32) -> (i32, i32) {
    %c1_i32 = arith.constant 1 : i32
    %0 = arith.muli %arg0, %c1_i32 : i32
    %1 = arith.addi %0, %arg1 : i32
    %c0_i32 = arith.constant 0 : i32
    %c0_i32_0 = arith.constant 0 : i32
    return %1, %c0_i32 : i32, i32
  }
  func.func @transform_1(%arg0: i32, %arg1: i32) -> (i32, i32) {
    %c0_i32 = arith.constant 0 : i32
    %c0_i32_0 = arith.constant 0 : i32
    return %arg0, %c0_i32 : i32, i32
  }
  func.func @transform_2(%arg0: i32, %arg1: i32) -> (i32, i32) {
    %c0_i32 = arith.constant 0 : i32
    %c0_i32_0 = arith.constant 0 : i32
    return %arg0, %c0_i32 : i32, i32
  }
}

</mosaic_0001>

<bundles_post_ra>
// kernel: tpu_custom_call.1
= control target key start
LH: loop header
LB: loop body
LE: loop exit
PB: predicated region body
PF: predicated region fallthrough
CT: control target
= control target key end

     0   :  { %8 = vsyncpa [#allocation3], 0  ;;  %s297_s0 = inlined_call_operand.hbm [shape: f32[16,1024], index: 0, kind: input, shape index: {}]   ;;  %s298_s1 = inlined_call_operand.hbm [shape: f32[8,1024], index: 1, kind: output, shape index: {0}]   ;;  %s299_s2 = inlined_call_operand.hbm [shape: f32[8,1024], index: 2, kind: output, shape index: {1}]  }
   0x1   :  { %9 = vsyncpa [#allocation4], 0 }
   0x2   :  { %10 = vsyncpa [#allocation7], 0  ;;  %s20_s11 = sshll.u32 %s297_s0, 4  ;;  %s268_s12 = smov [#allocation2]   ;;  %s21_s11 = int_to_ptr.hbm [resolvable:$true] %s20_s11 }
   0x3   :  { %s22_s13 = sshll.u32 %s268_s12, 4  ;;  %s269_s14 = smov 1024   ;;  %s23_s13 = int_to_ptr.vmem [resolvable:$true] %s22_s13 }
   0x4   :  { %s270_s15 = smov 64  }
   0x5   :  { %28 = dma.hbm_to_vmem [thread:$0]  %s21_s11, 2048, %s23_s13, [#allocation3], %s269_s14, %s269_s14, %s270_s15  }
   0x6   :  { %262 = dma.done.wait [#allocation3], 2048  }
   0x7   :  { %263 = vsyncadd [#allocation3], 4294965248  ;;  %v55_v0 = vld [vmem:[#allocation2] sm:$0xff]  ;;  %v56_v2 = vld [vmem:[#allocation2 + $0x8] sm:$0xff]  ;;  %s271_s0 = smov [#allocation5]   ;;  %s158_s19 = sshll.u32 %s298_s1, 4  ;;  %s159_s19 = int_to_ptr.hbm [resolvable:$true] %s158_s19 }
   0x8   :  { %v71_v1 = vld [vmem:[#allocation2 + $0x40] sm:$0xff]  ;;  %v72_v4 = vld [vmem:[#allocation2 + $0x48] sm:$0xff]  ;;  %v57_v5 = vld [vmem:[#allocation2 + $0x10] sm:$0xff]  ;;  %v63_v7 = vmul.f32 %v55_v0, %v55_v0  ;;  %v64_v9 = vmul.f32 %v56_v2, %v56_v2  ;;  %s156_s16 = sshll.u32 %s271_s0, 4  ;;  %s272_s1 = smov [#allocation6]   ;;  %s157_s16 = int_to_ptr.vmem [resolvable:$true] %s156_s16 }
   0x9   :  { %v79_v3 = vadd.f32 %v71_v1, %v55_v0  ;;  %v73_v6 = vld [vmem:[#allocation2 + $0x50] sm:$0xff]  ;;  %v87_v8 = vmul.f32 %v71_v1, %v71_v1  ;;  %v80_v10 = vadd.f32 %v72_v4, %v56_v2  ;;  %v58_v12 = vld [vmem:[#allocation2 + $0x18] sm:$0xff]  ;;  %v59_v14 = vld [vmem:[#allocation2 + $0x20] sm:$0xff]  ;;  %v88_v15 = vmul.f32 %v72_v4, %v72_v4  ;;  %s167_s20 = sshll.u32 %s272_s1, 4  ;;  %s169_s23 = sshll.u32 %s299_s2, 4  ;;  %s168_s20 = int_to_ptr.vmem [resolvable:$true] %s167_s20  ;;  %s170_s23 = int_to_ptr.hbm [resolvable:$true] %s169_s23 }
   0xa   :  { %v81_v11 = vadd.f32 %v73_v6, %v57_v5  ;;  %v74_v13 = vld [vmem:[#allocation2 + $0x58] sm:$0xff]  ;;  %v65_v16 = vmul.f32 %v57_v5, %v57_v5  ;;  %v75_v18 = vld [vmem:[#allocation2 + $0x60] sm:$0xff]  ;;  %v60_v19 = vld [vmem:[#allocation2 + $0x28] sm:$0xff]  ;;  %v89_v22 = vmul.f32 %v73_v6, %v73_v6  ;;  %v66_v33 = vmul.f32 %v58_v12, %v58_v12 }
   0xb   :  { %v82_v17 = vadd.f32 %v74_v13, %v58_v12  ;;  %v76_v20 = vld [vmem:[#allocation2 + $0x68] sm:$0xff]  ;;  %v95_v21 = vadd.f32 %v87_v8, %v63_v7  ;;  %v83_v23 = vadd.f32 %v75_v18, %v59_v14  ;;  %v61_v25 = vld [vmem:[#allocation2 + $0x30] sm:$0xff]  ;;  %119 = vst [vmem:[#allocation5] sm:$0xff] %v79_v3  ;;  %v62_v28 = vld [vmem:[#allocation2 + $0x38] sm:$0xff]  ;;  %v96_v30 = vadd.f32 %v88_v15, %v64_v9 }
   0xc   :  { %v84_v24 = vadd.f32 %v76_v20, %v60_v19  ;;  %v77_v26 = vld [vmem:[#allocation2 + $0x70] sm:$0xff]  ;;  %v78_v29 = vld [vmem:[#allocation2 + $0x78] sm:$0xff]  ;;  %120 = vst [vmem:[#allocation5 + $0x8] sm:$0xff] %v80_v10  ;;  %v97_v32 = vadd.f32 %v89_v22, %v65_v16  ;;  %v90_v34 = vmul.f32 %v74_v13, %v74_v13  ;;  %v67_v35 = vmul.f32 %v59_v14, %v59_v14 }
   0xd   :  { %v85_v27 = vadd.f32 %v77_v26, %v61_v25  ;;  %v86_v31 = vadd.f32 %v78_v29, %v62_v28  ;;  %121 = vst [vmem:[#allocation5 + $0x10] sm:$0xff] %v81_v11  ;;  %v91_v36 = vmul.f32 %v75_v18, %v75_v18  ;;  %v68_v38 = vmul.f32 %v60_v19, %v60_v19 }
   0xe   :  { %122 = vst [vmem:[#allocation5 + $0x18] sm:$0xff] %v82_v17  ;;  %v98_v37 = vadd.f32 %v90_v34, %v66_v33  ;;  %v92_v39 = vmul.f32 %v76_v20, %v76_v20  ;;  %v69_v40 = vmul.f32 %v61_v25, %v61_v25  ;;  %v93_v42 = vmul.f32 %v77_v26, %v77_v26 }
   0xf   :  { %123 = vst [vmem:[#allocation5 + $0x20] sm:$0xff] %v83_v23  ;;  %v99_v41 = vadd.f32 %v91_v36, %v67_v35  ;;  %v70_v43 = vmul.f32 %v62_v28, %v62_v28  ;;  %v94_v44 = vmul.f32 %v78_v29, %v78_v29 }
  0x10   :  { %124 = vst [vmem:[#allocation5 + $0x28] sm:$0xff] %v84_v24  ;;  %v100_v45 = vadd.f32 %v92_v39, %v68_v38  ;;  %v101_v46 = vadd.f32 %v93_v42, %v69_v40 }
  0x11   :  { %125 = vst [vmem:[#allocation5 + $0x30] sm:$0xff] %v85_v27  ;;  %v102_v47 = vadd.f32 %v94_v44, %v70_v43 }
  0x12   :  { %126 = vst [vmem:[#allocation5 + $0x38] sm:$0xff] %v86_v31 }
  0x13   :  { %143 = vst [vmem:[#allocation6] sm:$0xff] %v95_v21  ;;  %161 = dma.vmem_to_hbm [thread:$0]  %s157_s16, 1024, %s159_s19, [#allocation4]  }
  0x14   :  { %144 = vst [vmem:[#allocation6 + $0x8] sm:$0xff] %v96_v30 }
  0x15   :  { %145 = vst [vmem:[#allocation6 + $0x10] sm:$0xff] %v97_v32 }
  0x16   :  { %146 = vst [vmem:[#allocation6 + $0x18] sm:$0xff] %v98_v37 }
  0x17   :  { %147 = vst [vmem:[#allocation6 + $0x20] sm:$0xff] %v99_v41 }
  0x18   :  { %148 = vst [vmem:[#allocation6 + $0x28] sm:$0xff] %v100_v45 }
  0x19   :  { %149 = vst [vmem:[#allocation6 + $0x30] sm:$0xff] %v101_v46 }
  0x1a   :  { %150 = vst [vmem:[#allocation6 + $0x38] sm:$0xff] %v102_v47 }
  0x1b   :  { %172 = dma.vmem_to_hbm [thread:$0]  %s168_s20, 1024, %s170_s23, [#allocation7]  }
  0x1c   :  { %264 = dma.done.wait [#allocation4], 1024  }
  0x1d   :  { %265 = vsyncadd [#allocation4], 4294966272 }
  0x1e   :  { %266 = dma.done.wait [#allocation7], 1024  }
  0x1f   :  { %267 = vsyncadd [#allocation7], 4294966272 }
  0x20   :  { %181 = vsyncpa [#allocation3], 1 }
  0x21   :  { %182 = vsyncpa [#allocation4], 1 }
  0x22   :  { %183 = vsyncpa [#allocation7], 1 }

</bundles_post_ra>
